<compile_context>
chip_gen: v7x
topology: tpu7x:2x2x1
jax: 0.10.0
libtpu: 0.0.40
codegen_flags: <defaults>
</compile_context>

<pallas_src>
import functools
import math

import numpy as np
import jax
import jax.numpy as jnp
from jax import lax
from jax.experimental import pallas as pl
from jax.experimental.pallas import tpu as pltpu

_WIDTH = 1024  # lane-dense last dim (multiple of 128)


def _tpu_block_config():
    """(max block rows, scoped VMEM limit) per TPU generation.

    v5e/v6e (128 MiB physical VMEM): 8 MiB input blocks under a 64 MiB scoped
    limit.  v7x (64 MiB physical VMEM) and unknown chips: 4 MiB / 32 MiB.
    """
    try:
        info = pltpu.get_tpu_info()
        if int(getattr(info, "vmem_capacity_bytes", 0)) >= 128 * 1024 * 1024:
            return 2048, 64 * 1024 * 1024
    except Exception:
        pass
    return 1024, 32 * 1024 * 1024


def _awing_elementwise(pred, target, *, omega, epsilon, alpha, theta,
                       use_pl_recip=True):
    """Elementwise Adaptive Wing loss in f32 (matches the torch formula).

    Assumes theta > 0 and epsilon > 0 (as in the reference defaults).
    Note: torch.pow(0, e) with e < 0 (target > alpha and pred == target) gives
    inf in the reference; the guarded pow below returns 0 in that corner.
    """
    pred = pred.astype(jnp.float32)
    target = target.astype(jnp.float32)

    inv_eps = 1.0 / epsilon
    k = theta / epsilon
    log_k = math.log(k)

    diff = jnp.abs(pred - target)
    e = alpha - target                              # data-dependent exponent

    # log branch: omega * log(1 + (|d|/eps)^e), with 0^e := 0 (e > 0 in practice)
    x = diff * inv_eps
    pos = x > 0.0
    safe_x = jnp.where(pos, x, 1.0)
    pow_x_e = jnp.where(pos, jnp.exp(e * jnp.log(safe_x)), 0.0)
    log_branch = omega * jnp.log(1.0 + pow_x_e)

    if log_k == 0.0:
        # theta == epsilon (default parameters): everything constant-folds.
        a = e * (omega * inv_eps * 0.5)
        lin_branch = a * (diff - theta) + (omega * math.log(2.0))
    else:
        pow_k_e = jnp.exp(e * log_k)                # (theta/eps)^(alpha-y)
        denom = 1.0 + pow_k_e
        recip = pl.reciprocal(denom, approx=True) if use_pl_recip else 1.0 / denom
        # a = omega * e * k^e / (k * eps * (1 + k^e)); constant folded to one scalar
        a = e * pow_k_e * recip * (omega * inv_eps / k)
        # a*|d| - c  ==  a*(|d| - theta) + omega*log(1 + k^e)
        lin_branch = a * (diff - theta) + omega * jnp.log(denom)

    return jnp.where(diff < theta, log_branch, lin_branch)


def _awing_reduce_kernel(pred_ref, target_ref, acc_ref, *,
                         omega, epsilon, alpha, theta,
                         nblocks, blocks_per_core, valid_rows_last, needs_mask):
    """Accumulate elementwise AWing into a small resident per-core block."""
    p = pl.program_id(0)          # core-split axis ("parallel")
    i = pl.program_id(1)          # reduction axis ("arbitrary")

    @pl.when(i == 0)
    def _():
        acc_ref[...] = jnp.zeros_like(acc_ref)

    loss = _awing_elementwise(pred_ref[...], target_ref[...],
                              omega=omega, epsilon=epsilon,
                              alpha=alpha, theta=theta)
    block_rows, width = loss.shape

    def _accumulate(vals):
        # Tree-sum sublane groups (layout-preserving: trailing dims stay (8, W))
        # so the resident accumulator is only (8, W) instead of (block_rows, W).
        r = vals.shape[0]
        if r % 8 == 0 and r > 8:
            vals = vals.reshape(r // 8, 8, width).sum(axis=0)
        acc_ref[...] += vals

    if needs_mask:
        # Only the last (partially filled) block and clamped overflow blocks
        # pay for a row mask; all other blocks take the unmasked fast path.
        b = p * blocks_per_core + i

        @pl.when(b < nblocks - 1)
        def _():
            _accumulate(loss)

        @pl.when(b >= nblocks - 1)
        def _():
            nvalid = jnp.where(b == nblocks - 1, valid_rows_last, 0)
            row_ix = lax.broadcasted_iota(jnp.int32, (block_rows, width), 0)
            _accumulate(jnp.where(row_ix < nvalid, loss, 0.0))
    else:
        _accumulate(loss)


def _awing_map_kernel(pred_ref, target_ref, out_ref, *,
                      omega, epsilon, alpha, theta):
    """reduction='none': elementwise loss, stored in the input dtype."""
    out_ref[...] = _awing_elementwise(
        pred_ref[...], target_ref[...],
        omega=omega, epsilon=epsilon, alpha=alpha, theta=theta,
    ).astype(out_ref.dtype)


def adaptive_wing_loss(pred, target, omega=5.0, epsilon=0.5, alpha=2.1,
                       theta=0.5, reduction="mean"):
    if reduction not in ("mean", "sum", "none"):
        raise ValueError(f"Invalid reduction: {reduction}")
    omega, epsilon = float(omega), float(epsilon)
    alpha, theta = float(alpha), float(theta)
    kparams = dict(omega=omega, epsilon=epsilon, alpha=alpha, theta=theta)

    orig_shape = pred.shape
    orig_dtype = pred.dtype
    n = int(np.prod(orig_shape)) if orig_shape else 1
    if n == 0:
        if reduction == "none":
            return jnp.zeros(orig_shape, orig_dtype)
        return jnp.asarray(jnp.nan if reduction == "mean" else 0.0, orig_dtype)

    max_rows, vmem_limit = _tpu_block_config()
    in_bytes = pred.dtype.itemsize

    flat_p = pred.reshape(-1)      # free (contiguous)
    flat_t = target.reshape(-1)
    rows = n // _WIDTH
    lane_tail = n - rows * _WIDTH

    if reduction == "none":
        # Lane-aligned shapes (the common heatmap case): zero extra copies.
        # Unaligned shapes need one pad + one output slice (no way around an
        # input copy without manual HBM DMA for a ragged elementwise output).
        padded_rows = rows + (1 if lane_tail else 0)
        if lane_tail:
            pad = padded_rows * _WIDTH - n
            flat_p = jnp.pad(flat_p, (0, pad))
            flat_t = jnp.pad(flat_t, (0, pad))
        p2 = flat_p.reshape(padded_rows, _WIDTH)
        t2 = flat_t.reshape(padded_rows, _WIDTH)

        block_rows = padded_rows if padded_rows <= max_rows else max_rows
        nblocks = pl.cdiv(padded_rows, block_rows)
        out = pl.pallas_call(
            functools.partial(_awing_map_kernel, **kparams),
            out_shape=jax.ShapeDtypeStruct((padded_rows, _WIDTH), orig_dtype),
            grid=(nblocks,),
            in_specs=[pl.BlockSpec((block_rows, _WIDTH), lambda i: (i, 0)),
                      pl.BlockSpec((block_rows, _WIDTH), lambda i: (i, 0))],
            out_specs=pl.BlockSpec((block_rows, _WIDTH), lambda i: (i, 0)),
            compiler_params=pltpu.CompilerParams(
                dimension_semantics=("parallel",),
                vmem_limit_bytes=vmem_limit),
            cost_estimate=pl.CostEstimate(
                flops=20 * padded_rows * _WIDTH,
                transcendentals=3 * padded_rows * _WIDTH,
                bytes_accessed=(2 * in_bytes + orig_dtype.itemsize)
                               * padded_rows * _WIDTH),
        )(p2, t2)
        out = out.reshape(-1)
        if lane_tail:
            out = out[:n]
        return out.reshape(orig_shape)

    # ---------------- mean / sum ----------------
    tail_sum = jnp.float32(0.0)
    if lane_tail:
        # <1024-element ragged tail: plain jnp (tiny), no pad of the big arrays.
        tail_loss = _awing_elementwise(flat_p[rows * _WIDTH:],
                                       flat_t[rows * _WIDTH:],
                                       **kparams, use_pl_recip=False)
        tail_sum = jnp.sum(tail_loss, dtype=jnp.float32)
        if rows:
            flat_p = flat_p[: rows * _WIDTH]
            flat_t = flat_t[: rows * _WIDTH]

    if rows == 0:
        total = tail_sum
    else:
        p2 = flat_p.reshape(rows, _WIDTH)
        t2 = flat_t.reshape(rows, _WIDTH)

        block_rows = rows if rows <= max_rows else max_rows
        nblocks = pl.cdiv(rows, block_rows)
        # Leading 'parallel' axis: lets v7x megacore split the reduction; it is
        # a harmless serial loop on single-TC chips.
        ncores = 2 if nblocks >= 2 else 1
        blocks_per_core = pl.cdiv(nblocks, ncores)
        acc_rows = 8 if block_rows % 8 == 0 else block_rows
        valid_rows_last = rows - (nblocks - 1) * block_rows
        needs_mask = (valid_rows_last != block_rows) or \
                     (ncores * blocks_per_core != nblocks)

        kernel = functools.partial(
            _awing_reduce_kernel, **kparams,
            nblocks=nblocks, blocks_per_core=blocks_per_core,
            valid_rows_last=valid_rows_last, needs_mask=needs_mask)

        def in_map(p, i):
            # Clamp so overflow steps (odd nblocks split across 2 cores) still
            # issue an in-bounds DMA; their contribution is masked to zero.
            return (jnp.minimum(p * blocks_per_core + i, nblocks - 1), 0)

        partials = pl.pallas_call(
            kernel,
            out_shape=jax.ShapeDtypeStruct((ncores, acc_rows, _WIDTH),
                                           jnp.float32),
            grid=(ncores, blocks_per_core),
            in_specs=[pl.BlockSpec((block_rows, _WIDTH), in_map),
                      pl.BlockSpec((block_rows, _WIDTH), in_map)],
            out_specs=pl.BlockSpec((None, acc_rows, _WIDTH),
                                   lambda p, i: (p, 0, 0)),
            compiler_params=pltpu.CompilerParams(
                dimension_semantics=("parallel", "arbitrary"),
                vmem_limit_bytes=vmem_limit),
            cost_estimate=pl.CostEstimate(
                flops=20 * rows * _WIDTH,
                transcendentals=3 * rows * _WIDTH,
                bytes_accessed=2 * in_bytes * rows * _WIDTH
                               + 4 * ncores * acc_rows * _WIDTH),
        )(p2, t2)

        total = jnp.sum(partials, dtype=jnp.float32) + tail_sum

    if reduction == "mean":
        total = total / n
    return total.astype(orig_dtype)


def _awing_ref(pred, target, omega=5.0, epsilon=0.5, alpha=2.1, theta=0.5,
               reduction="mean"):
    """Pure-JAX transcription of the PyTorch AdaptiveWingLoss.forward."""
    pred = pred.astype(jnp.float32)
    target = target.astype(jnp.float32)
    diff = jnp.abs(pred - target)
    k = theta / epsilon
    a = (omega * (1.0 / (1.0 + jnp.power(k, alpha - target)))
         * (alpha - target) * jnp.power(k, alpha - target - 1.0) * (1.0 / epsilon))
    c = theta * a - omega * jnp.log(1.0 + jnp.power(k, alpha - target))
    loss = jnp.where(diff < theta,
                     omega * jnp.log(1.0 + jnp.power(diff / epsilon, alpha - target)),
                     a * diff - c)
    if reduction == "mean":
        return jnp.mean(loss)
    if reduction == "sum":
        return jnp.sum(loss)
    return loss


if __name__ == "__main__":
    key = jax.random.PRNGKey(0)
    k1, k2, k3, k4 = jax.random.split(key, 4)

    # 2-D heatmap regression: (batch, landmarks, H, W), values in [0, 1].
    B, C, H, W = 2, 4, 16, 16
    pred = jax.random.uniform(k1, (B, C, H, W), jnp.float32)
    target = jax.random.uniform(k2, (B, C, H, W), jnp.float32)

    out_mean = jax.block_until_ready(
        adaptive_wing_loss(pred, target, reduction="mean"))
    out_sum = jax.block_until_ready(
        adaptive_wing_loss(pred, target, reduction="sum"))
    out_none = jax.block_until_ready(
        adaptive_wing_loss(pred, target, reduction="none"))

    np.testing.assert_allclose(np.asarray(out_mean),
                               np.asarray(_awing_ref(pred, target, reduction="mean")),
                               rtol=1e-5, atol=1e-5)
    np.testing.assert_allclose(np.asarray(out_sum),
                               np.asarray(_awing_ref(pred, target, reduction="sum")),
                               rtol=1e-4, atol=1e-3)
    np.testing.assert_allclose(np.asarray(out_none),
                               np.asarray(_awing_ref(pred, target, reduction="none")),
                               rtol=1e-5, atol=1e-5)

    # General (theta != epsilon) parameters: exercises the exp/log + approx
    # reciprocal path (looser tolerance because of the approximate reciprocal).
    out_gen = jax.block_until_ready(
        adaptive_wing_loss(pred, target, omega=7.0, epsilon=0.7, alpha=2.1,
                           theta=0.4, reduction="mean"))
    np.testing.assert_allclose(
        np.asarray(out_gen),
        np.asarray(_awing_ref(pred, target, omega=7.0, epsilon=0.7, alpha=2.1,
                              theta=0.4, reduction="mean")),
        rtol=5e-3, atol=5e-3)

    # Larger, lane- and block-unaligned case: exercises the multi-block grid,
    # the 2-way core split, the masked final block and the jnp lane tail.
    B2, C2, H2, W2 = 6, 5, 293, 311
    pred2 = jax.random.uniform(k3, (B2, C2, H2, W2), jnp.float32)
    target2 = jax.random.uniform(k4, (B2, C2, H2, W2), jnp.float32)
    out2 = jax.block_until_ready(
        adaptive_wing_loss(pred2, target2, reduction="mean"))
    np.testing.assert_allclose(np.asarray(out2),
                               np.asarray(_awing_ref(pred2, target2, reduction="mean")),
                               rtol=1e-4, atol=1e-5)

    print("KERNEL_OK")
</pallas_src>

<mosaic_0001>
module attributes {stable_mosaic.version = 11 : i64} {
  func.func @_awing_reduce_kernel(%arg0: i32, %arg1: i32, %arg2: memref<2x1024xf32, #tpu.memory_space<vmem>>, %arg3: memref<2x1024xf32, #tpu.memory_space<vmem>>, %arg4: memref<1x2x1024xf32, #tpu.memory_space<vmem>>) attributes {dimension_semantics = [#tpu.dimension_semantics<parallel>, #tpu.dimension_semantics<arbitrary>], iteration_bounds = array<i64: 1, 1>, scalar_prefetch = 0 : i64, scratch_operands = 0 : i64, tpu.core_type = #tpu.core_type<tc>, window_params = [{transform_indices = @transform_0, window_bounds = array<i64: 2, 1024>}, {transform_indices = @transform_1, window_bounds = array<i64: 2, 1024>}, {transform_indices = @transform_2, window_bounds = array<i64: 1, 2, 1024>}]} {
    %c0_i32 = arith.constant 0 : i32
    %0 = arith.cmpi eq, %arg1, %c0_i32 : i32
    %1 = arith.extui %0 : i1 to i32
    %c0_i32_0 = arith.constant 0 : i32
    %2 = arith.cmpi ne, %1, %c0_i32_0 : i32
    scf.if %2 {
      %cst_20 = arith.constant 0.000000e+00 : f32
      %41 = vector.broadcast %cst_20 : f32 to vector<2x1024xf32>
      %c0_21 = arith.constant 0 : index
      %c0_22 = arith.constant 0 : index
      %c0_23 = arith.constant 0 : index
      %42 = vector.load %arg4[%c0_21, %c0_22, %c0_23] : memref<1x2x1024xf32, #tpu.memory_space<vmem>>, vector<1x2x1024xf32>
      %43 = vector.shape_cast %42 : vector<1x2x1024xf32> to vector<2x1024xf32>
      %44 = vector.shape_cast %41 : vector<2x1024xf32> to vector<1x2x1024xf32>
      tpu.vector_store %arg4[%c0_21, %c0_22, %c0_23], %44 {strides = array<i32>} : memref<1x2x1024xf32, #tpu.memory_space<vmem>>, vector<1x2x1024xf32>,
    } else {
    }
    %c0 = arith.constant 0 : index
    %c0_1 = arith.constant 0 : index
    %3 = vector.load %arg2[%c0, %c0_1] : memref<2x1024xf32, #tpu.memory_space<vmem>>, vector<2x1024xf32>
    %c0_2 = arith.constant 0 : index
    %c0_3 = arith.constant 0 : index
    %4 = vector.load %arg3[%c0_2, %c0_3] : memref<2x1024xf32, #tpu.memory_space<vmem>>, vector<2x1024xf32>
    %5 = arith.subf %3, %4 : vector<2x1024xf32>
    %6 = math.absf %5 : vector<2x1024xf32>
    %cst = arith.constant 2.100000e+00 : f32
    %7 = vector.broadcast %cst : f32 to vector<2x1024xf32>
    %8 = arith.subf %7, %4 : vector<2x1024xf32>
    %cst_4 = arith.constant 2.000000e+00 : f32
    %9 = vector.broadcast %cst_4 : f32 to vector<2x1024xf32>
    %10 = arith.mulf %6, %9 : vector<2x1024xf32>
    %cst_5 = arith.constant 0.000000e+00 : f32
    %11 = vector.broadcast %cst_5 : f32 to vector<2x1024xf32>
    %12 = arith.cmpf ogt, %10, %11 : vector<2x1024xf32>
    %cst_6 = arith.constant 1.000000e+00 : f32
    %13 = vector.broadcast %cst_6 : f32 to vector<2x1024xf32>
    %14 = arith.select %12, %10, %13 : vector<2x1024xi1>, vector<2x1024xf32>
    %15 = math.log %14 : vector<2x1024xf32>
    %16 = arith.mulf %8, %15 : vector<2x1024xf32>
    %17 = math.exp %16 : vector<2x1024xf32>
    %cst_7 = arith.constant 0.000000e+00 : f32
    %18 = vector.broadcast %cst_7 : f32 to vector<2x1024xf32>
    %19 = arith.select %12, %17, %18 : vector<2x1024xi1>, vector<2x1024xf32>
    %cst_8 = arith.constant 1.000000e+00 : f32
    %20 = vector.broadcast %cst_8 : f32 to vector<2x1024xf32>
    %21 = arith.addf %20, %19 : vector<2x1024xf32>
    %22 = math.log %21 : vector<2x1024xf32>
    %cst_9 = arith.constant 5.000000e+00 : f32
    %23 = vector.broadcast %cst_9 : f32 to vector<2x1024xf32>
    %24 = arith.mulf %23, %22 : vector<2x1024xf32>
    %cst_10 = arith.constant 5.000000e+00 : f32
    %25 = vector.broadcast %cst_10 : f32 to vector<2x1024xf32>
    %26 = arith.mulf %8, %25 : vector<2x1024xf32>
    %cst_11 = arith.constant 5.000000e-01 : f32
    %27 = vector.broadcast %cst_11 : f32 to vector<2x1024xf32>
    %28 = arith.subf %6, %27 : vector<2x1024xf32>
    %29 = arith.mulf %26, %28 : vector<2x1024xf32>
    %cst_12 = arith.constant 3.46573591 : f32
    %30 = vector.broadcast %cst_12 : f32 to vector<2x1024xf32>
    %31 = arith.addf %29, %30 : vector<2x1024xf32>
    %cst_13 = arith.constant 5.000000e-01 : f32
    %32 = vector.broadcast %cst_13 : f32 to vector<2x1024xf32>
    %33 = arith.cmpf olt, %6, %32 : vector<2x1024xf32>
    %34 = arith.select %33, %24, %31 : vector<2x1024xi1>, vector<2x1024xf32>
    %c0_14 = arith.constant 0 : index
    %c0_15 = arith.constant 0 : index
    %c0_16 = arith.constant 0 : index
    %35 = vector.load %arg4[%c0_14, %c0_15, %c0_16] : memref<1x2x1024xf32, #tpu.memory_space<vmem>>, vector<1x2x1024xf32>
    %36 = vector.shape_cast %35 : vector<1x2x1024xf32> to vector<2x1024xf32>
    %37 = arith.addf %36, %34 : vector<2x1024xf32>
    %c0_17 = arith.constant 0 : index
    %c0_18 = arith.constant 0 : index
    %c0_19 = arith.constant 0 : index
    %38 = vector.load %arg4[%c0_17, %c0_18, %c0_19] : memref<1x2x1024xf32, #tpu.memory_space<vmem>>, vector<1x2x1024xf32>
    %39 = vector.shape_cast %38 : vector<1x2x1024xf32> to vector<2x1024xf32>
    %40 = vector.shape_cast %37 : vector<2x1024xf32> to vector<1x2x1024xf32>
    tpu.vector_store %arg4[%c0_17, %c0_18, %c0_19], %40 {strides = array<i32>} : memref<1x2x1024xf32, #tpu.memory_space<vmem>>, vector<1x2x1024xf32>,
    return
  }
  func.func @transform_0(%arg0: i32, %arg1: i32) -> (i32, i32) {
    %c1_i32 = arith.constant 1 : i32
    %0 = arith.muli %arg0, %c1_i32 : i32
    %1 = arith.addi %0, %arg1 : i32
    %c0_i32 = arith.constant 0 : i32
    %2 = arith.minsi %1, %c0_i32 : i32
    %c0_i32_0 = arith.constant 0 : i32
    %c0_i32_1 = arith.constant 0 : i32
    return %2, %c0_i32_0 : i32, i32
  }
  func.func @transform_1(%arg0: i32, %arg1: i32) -> (i32, i32) {
    %c1_i32 = arith.constant 1 : i32
    %0 = arith.muli %arg0, %c1_i32 : i32
    %1 = arith.addi %0, %arg1 : i32
    %c0_i32 = arith.constant 0 : i32
    %2 = arith.minsi %1, %c0_i32 : i32
    %c0_i32_0 = arith.constant 0 : i32
    %c0_i32_1 = arith.constant 0 : i32
    return %2, %c0_i32_0 : i32, i32
  }
  func.func @transform_2(%arg0: i32, %arg1: i32) -> (i32, i32, i32) {
    %c0_i32 = arith.constant 0 : i32
    %c0_i32_0 = arith.constant 0 : i32
    %c0_i32_1 = arith.constant 0 : i32
    return %arg0, %c0_i32, %c0_i32_0 : i32, i32, i32
  }
}

</mosaic_0001>

<bundles_post_ra>
// kernel: tpu_custom_call.1
= control target key start
LH: loop header
LB: loop body
LE: loop exit
PB: predicated region body
PF: predicated region fallthrough
CT: control target
= control target key end

     0   :  { %7 = vsyncpa [#allocation3], 0  ;;  %s282_s0 = inlined_call_operand.hbm [shape: f32[2,1024], index: 0, kind: input, shape index: {}]   ;;  %s283_s1 = inlined_call_operand.hbm [shape: f32[2,1024], index: 1, kind: input, shape index: {}]   ;;  %s284_s2 = inlined_call_operand.hbm [shape: f32[1,2,1024], index: 2, kind: output, shape index: {}]  }
   0x1   :  { %8 = vsyncpa [#allocation6], 0 }
   0x2   :  { %9 = vsyncpa [#allocation4], 0  ;;  %s224_s9 = smov [#allocation2]   ;;  %s225_s11 = smov [#allocation5]  }
   0x3   :  { %s22_s10 = sshll.u32 %s224_s9, 4  ;;  %s38_s12 = sshll.u32 %s225_s11, 4  ;;  %s23_s10 = int_to_ptr.vmem [resolvable:$true] %s22_s10  ;;  %s39_s12 = int_to_ptr.vmem [resolvable:$true] %s38_s12 }
   0x4   :  { %s152_s15 = scalar_lea.hbm %s282_s0, 256 }
   0x5   :  { %p153_p0 = scmp.ne.s32.totalorder %s282_s0, %s152_s15  ;;  %p156_p1 = scmp.lt.u32.totalorder %s152_s15, %s282_s0 }
   0x7   :  { %p158_p2 = pnand %p156_p1, %p153_p0 }
   0x9   :  { %161 = shalt.err (!%p158_p2)
}
   0xa   :  { %s162_s20 = scalar_lea.vmem %s23_s10, 256  ;;  %p167_p4 = scmp.lt.s32.totalorder %s23_s10, %s23_s10 }
   0xb   :  { %p163_p3 = scmp.ne.s32.totalorder %s23_s10, %s162_s20  ;;  %p168_p5 = scmp.lt.s32.totalorder %s162_s20, %s162_s20 }
   0xd   :  { %p169_p6 = por %p168_p5, %p167_p4 }
   0xf   :  { %p170_p7 = pnand %p169_p6, %p163_p3 }
  0x11   :  { %173 = shalt.err (!%p170_p7)
}
  0x12   :  { %25 = dma.hbm_to_vmem [thread:$0]  %s282_s0, 256, %s23_s10, [#allocation3]  }
  0x13   :  { %s174_s25 = scalar_lea.hbm %s283_s1, 256 }
  0x14   :  { %p175_p8 = scmp.ne.s32.totalorder %s283_s1, %s174_s25  ;;  %p178_p9 = scmp.lt.u32.totalorder %s174_s25, %s283_s1 }
  0x16   :  { %p180_p10 = pnand %p178_p9, %p175_p8 }
  0x18   :  { %183 = shalt.err (!%p180_p10)
}
  0x19   :  { %s184_s30 = scalar_lea.vmem %s39_s12, 256  ;;  %p189_p12 = scmp.lt.s32.totalorder %s39_s12, %s39_s12 }
  0x1a   :  { %p185_p11 = scmp.ne.s32.totalorder %s39_s12, %s184_s30  ;;  %p190_p13 = scmp.lt.s32.totalorder %s184_s30, %s184_s30 }
  0x1c   :  { %p191_p0 = por %p190_p13, %p189_p12 }
  0x1e   :  { %p192_p1 = pnand %p191_p0, %p185_p11 }
  0x20   :  { %195 = shalt.err (!%p192_p1)
}
  0x21   :  { %41 = dma.hbm_to_vmem [thread:$0]  %s283_s1, 256, %s39_s12, [#allocation6]  }
  0x22   :  { %218 = dma.done.wait [#allocation3], 256  }
  0x23   :  { %219 = vsyncadd [#allocation3], 4294967040 }
  0x24   :  { %220 = dma.done.wait [#allocation6], 256  }
  0x25   :  { %221 = vsyncadd [#allocation6], 4294967040  ;;  %v60_v0 = vld [vmem:[#allocation2] sm:$0xff]  ;;  %v62_v1 = vld [vmem:[#allocation5] sm:$0xff]  ;;  %s226_s1 = smov [#allocation7]  }
  0x26   :  { %v61_v2 = vld [vmem:[#allocation2 + $0x8] sm:$0xff]  ;;  %v64_v3 = vsub.f32 %v60_v0, %v62_v1  ;;  %v63_v4 = vld [vmem:[#allocation5 + $0x8] sm:$0xff]  ;;  %v68_v12 = vsub.f32 2.1, %v62_v1  ;;  %s120_s4 = sshll.u32 %s226_s1, 4  ;;  %s121_s4 = int_to_ptr.vmem [resolvable:$true] %s120_s4 }
  0x27   :  { %v65_v5 = vsub.f32 %v61_v2, %v63_v4  ;;  %v69_v14 = vsub.f32 2.1, %v63_v4  ;;  %s196_s5 = scalar_lea.vmem %s121_s4, 256  ;;  %p201_p3 = scmp.lt.s32.totalorder %s121_s4, %s121_s4 }
  0x28   :  { %v66_v6 = vand.u32 2147483647, %v64_v3  ;;  %v96_v28 = vmul.f32 5.0, %v68_v12  ;;  %p197_p2 = scmp.ne.s32.totalorder %s121_s4, %s196_s5  ;;  %p202_p4 = scmp.lt.s32.totalorder %s196_s5, %s196_s5 }
  0x29   :  { %v67_v7 = vand.u32 2147483647, %v65_v5  ;;  %v97_v30 = vmul.f32 5.0, %v69_v14 }
  0x2a   :  { %v70_v8 = vmul.f32 2.0, %v66_v6  ;;  %v134_v29 = vadd.f32 -0.5, %v66_v6  ;;  %vm104_vm2 = vcmp.lt.f32.partialorder %v66_v6, 0.5  ;;  %p203_p5 = por %p202_p4, %p201_p3 }
  0x2b   :  { %v71_v9 = vmul.f32 2.0, %v67_v7  ;;  %v135_v31 = vadd.f32 -0.5, %v67_v7  ;;  %vm105_vm3 = vcmp.lt.f32.partialorder %v67_v7, 0.5 }
  0x2c   :  { %vm72_vm0 = vcmp.gt.f32.partialorder %v70_v8, 0.0  ;;  %v100_v32 = vmul.f32 %v134_v29, %v96_v28  ;;  %p204_p6 = pnand %p203_p5, %p197_p2 }
  0x2d   :  { %v74_v10 = vsel %vm72_vm0, %v70_v8, 1.0  ;;  %vm73_vm1 = vcmp.gt.f32.partialorder %v71_v9, 0.0  ;;  %v101_v33 = vmul.f32 %v135_v31, %v97_v30 }
  0x2e   :  { %140 = vlog2.f32 %v74_v10  ;;  %v75_v11 = vsel %vm73_vm1, %v71_v9, 1.0  ;;  %v102_v37 = vadd.f32 3.465736, %v100_v32 }
  0x2f   :  { %142 = vlog2.f32 %v75_v11  ;;  %v103_v39 = vadd.f32 3.465736, %v101_v33 }
  0x38   :  { %v141_v13 = vpop.eup %140 }
  0x39   :  { %v143_v15 = vpop.eup %142  ;;  %v77_v16 = vmul.f32 0.6931472, %v141_v13 }
  0x3a   :  { %v79_v17 = vmul.f32 0.6931472, %v143_v15 }
  0x3b   :  { %v80_v18 = vmul.f32 %v77_v16, %v68_v12 }
  0x3c   :  { %v81_v19 = vmul.f32 %v79_v17, %v69_v14 }
  0x3d   :  { %v82_v20 = vmul.f32 1.442695, %v80_v18 }
  0x3e   :  { %v84_v21 = vmul.f32 1.442695, %v81_v19 }
  0x3f   :  { %144 = vpow2.f32 %v82_v20 }
  0x40   :  { %146 = vpow2.f32 %v84_v21 }
  0x49   :  { %v145_v22 = vpop.eup %144 }
  0x4a   :  { %v147_v23 = vpop.eup %146  ;;  %v86_v24 = vsel %vm72_vm0, %v145_v22, 0.0 }
  0x4b   :  { %v88_v25 = vadd.f32 1.0, %v86_v24  ;;  %v87_v26 = vsel %vm73_vm1, %v147_v23, 0.0 }
  0x4c   :  { %v89_v27 = vadd.f32 1.0, %v87_v26 }
  0x4d   :  { %148 = vlog2.f32 %v88_v25 }
  0x4e   :  { %150 = vlog2.f32 %v89_v27 }
  0x57   :  { %v149_v34 = vpop.eup %148 }
  0x58   :  { %v151_v35 = vpop.eup %150  ;;  %v91_v36 = vmul.f32 0.6931472, %v149_v34 }
  0x59   :  { %v93_v38 = vmul.f32 0.6931472, %v151_v35 }
  0x5a   :  { %v94_v40 = vmul.f32 5.0, %v91_v36 }
  0x5b   :  { %v95_v41 = vmul.f32 5.0, %v93_v38 }
  0x5c   :  { %v106_v42 = vsel %vm104_vm2, %v94_v40, %v102_v37 }
  0x5d   :  { %v107_v43 = vsel %vm105_vm3, %v95_v41, %v103_v39  ;;  %112 = vst [vmem:[#allocation7] sm:$0xff] %v106_v42 }
  0x5e   :  { %113 = vst [vmem:[#allocation7 + $0x8] sm:$0xff] %v107_v43 }
  0x5f   :  { %207 = shalt.err (!%p204_p6)
}
  0x60   :  { %s208_s8 = scalar_lea.hbm %s284_s2, 256 }
  0x61   :  { %p209_p7 = scmp.ne.s32.totalorder %s284_s2, %s208_s8  ;;  %p212_p8 = scmp.lt.u32.totalorder %s208_s8, %s284_s2 }
  0x63   :  { %p214_p9 = pnand %p212_p8, %p209_p7 }
  0x65   :  { %217 = shalt.err (!%p214_p9)
}
  0x66   :  { %123 = dma.vmem_to_hbm [thread:$0]  %s121_s4, 256, %s284_s2, [#allocation4]  }
  0x67   :  { %222 = dma.done.wait [#allocation4], 256  }
  0x68   :  { %223 = vsyncadd [#allocation4], 4294967040 }
  0x69   :  { %127 = vsyncpa [#allocation3], 1 }
  0x6a   :  { %128 = vsyncpa [#allocation6], 1 }
  0x6b   :  { %129 = vsyncpa [#allocation4], 1 }

</bundles_post_ra>
